<compile_context>
chip_gen: v5e
topology: v5e:2x2
jax: 0.10.0
libtpu: 0.0.40
codegen_flags: <defaults>
</compile_context>

<pallas_src>
import jax
import jax.numpy as jnp
from jax.experimental import pallas as pl
from jax.experimental.pallas import tpu as pltpu

EPS = 1e-8  # nn.CosineSimilarity default eps


def _round_up(a, b):
    return (a + b - 1) // b * b


def _similarity_kernel(x_ref, yt_ref, xinv_ref, yinv_ref, o_ref):
    """One (TN, TM) output tile, accumulated over the K (feature) grid axis.

    x_ref   : [TN, TK]  lhs tile (native dtype, e.g. bf16/f32)
    yt_ref  : [TK, TM]  rhs tile (y pre-transposed to [D, M] in the wrapper)
    xinv_ref: [TN, 1]   f32, (1 / ||x_i||) / temp
    yinv_ref: [1, TM]   f32, 1 / ||y_j||
    o_ref   : [TN, TM]  f32 output tile (doubles as the accumulator: its block
                        index is independent of k, so it stays resident in VMEM
                        across the whole reduction)
    """
    k = pl.program_id(2)

    @pl.when(k == 0)
    def _():
        o_ref[...] = jnp.zeros_like(o_ref)

    # MXU matmul in the native input dtype, f32 accumulation straight into o_ref.
    o_ref[...] += jnp.dot(x_ref[...], yt_ref[...],
                          preferred_element_type=jnp.float32)

    @pl.when(k == pl.num_programs(2) - 1)
    def _():
        # Epilogue: single broadcast multiply (inv-norms and 1/temp were
        # precomputed once in the wrapper).
        o_ref[...] *= xinv_ref[...] * yinv_ref[...]


def similarity(x, y, temp, *, tn_max=256, tm_max=512, tk_max=512):
    """Cosine similarity / temp.

    Accepts either:
      x:[N,1,D], y:[1,M,D]  (PyTorch broadcast convention)  -> out:[N,M]
      x:[N,D],   y:[M,D]                                    -> out:[N,M]
    """
    x2 = jnp.squeeze(x, axis=1) if x.ndim == 3 else x
    y2 = jnp.squeeze(y, axis=0) if y.ndim == 3 else y

    n, d = x2.shape
    m, _ = y2.shape

    # Tile sizes: sublane multiple of 8 for N; lane multiples of 128 for M and K
    # (lane-dense output stores, MXU-friendly slabs). Caps keep a handful of
    # double-buffered tiles comfortably inside VMEM on every generation
    # (v5e/v6e 128 MiB, v7x 64 MiB): worst case f32 ~ 2*(256*512 + 512*512
    # + 256*512)*4B ≈ 5 MiB.
    tn = min(tn_max, _round_up(n, 8))
    tm = min(tm_max, _round_up(m, 128))
    tk = min(tk_max, _round_up(d, 128))

    n_pad = _round_up(n, tn)
    m_pad = _round_up(m, tm)
    d_pad = _round_up(d, tk)

    xp = jnp.pad(x2, ((0, n_pad - n), (0, d_pad - d)))
    yp = jnp.pad(y2, ((0, m_pad - m), (0, d_pad - d)))

    # Inverse norms in f32, eps-clamped to match nn.CosineSimilarity:
    #   1 / max(||v||, eps) == rsqrt(max(||v||^2, eps^2)).
    # 1/temp is folded into the x scale. Zero pad rows give 1/eps, but their
    # dot products are 0 so the padded outputs are 0 and get sliced away.
    xs = xp.astype(jnp.float32)
    ys = yp.astype(jnp.float32)
    x_inv = jax.lax.rsqrt(
        jnp.maximum(jnp.sum(xs * xs, axis=-1, keepdims=True), EPS * EPS)
    ) / jnp.float32(temp)                                            # [n_pad, 1]
    y_inv = jax.lax.rsqrt(
        jnp.maximum(jnp.sum(ys * ys, axis=-1, keepdims=True), EPS * EPS)
    ).T                                                              # [1, m_pad]

    # Transpose y once up front (cheap XLA op) so the kernel never transposes.
    ytp = yp.T                                                       # [d_pad, m_pad]

    grid = (n_pad // tn, m_pad // tm, d_pad // tk)

    out = pl.pallas_call(
        _similarity_kernel,
        out_shape=jax.ShapeDtypeStruct((n_pad, m_pad), jnp.float32),
        grid_spec=pltpu.PrefetchScalarGridSpec(
            num_scalar_prefetch=0,
            grid=grid,
            in_specs=[
                pl.BlockSpec((tn, tk), lambda i, j, k: (i, k)),   # x tile
                pl.BlockSpec((tk, tm), lambda i, j, k: (k, j)),   # y^T tile
                pl.BlockSpec((tn, 1), lambda i, j, k: (i, 0)),    # x inv-norm / temp
                pl.BlockSpec((1, tm), lambda i, j, k: (0, j)),    # y inv-norm
            ],
            out_specs=pl.BlockSpec((tn, tm), lambda i, j, k: (i, j)),
        ),
        compiler_params=pltpu.CompilerParams(
            dimension_semantics=("parallel", "parallel", "arbitrary")),
    )(xp, ytp, x_inv, y_inv)

    return out[:n, :m]


if __name__ == "__main__":
    key = jax.random.PRNGKey(0)
    kx, ky, ka, kb = jax.random.split(key, 4)

    temp = 0.05  # typical SimCSE temperature

    # --- Small PyTorch-broadcast-style demo: x:[N,1,D], y:[1,M,D] -> [N,M] ---
    N, M, D = 8, 8, 32
    x = jax.random.normal(kx, (N, 1, D), dtype=jnp.float32)
    y = jax.random.normal(ky, (1, M, D), dtype=jnp.float32)

    out = jax.block_until_ready(similarity(x, y, temp))

    x2 = jnp.squeeze(x, 1)
    y2 = jnp.squeeze(y, 0)
    xn = jnp.maximum(jnp.linalg.norm(x2, axis=-1, keepdims=True), EPS)
    yn = jnp.maximum(jnp.linalg.norm(y2, axis=-1, keepdims=True), EPS)
    ref = (x2 @ y2.T) / (xn * yn.T) / temp
    assert out.shape == (N, M)
    assert jnp.allclose(out, ref, atol=1e-4, rtol=1e-4), float(jnp.max(jnp.abs(out - ref)))

    # --- Larger multi-tile check: exercises the (i, j, k) grid, accumulator and padding ---
    N2, M2, D2 = 272, 384, 320
    a = jax.random.normal(ka, (N2, D2), dtype=jnp.float32)
    b = jax.random.normal(kb, (M2, D2), dtype=jnp.float32)

    out2 = jax.block_until_ready(
        similarity(a, b, temp, tn_max=128, tm_max=128, tk_max=128))

    an = jnp.maximum(jnp.linalg.norm(a, axis=-1, keepdims=True), EPS)
    bn = jnp.maximum(jnp.linalg.norm(b, axis=-1, keepdims=True), EPS)
    ref2 = (a @ b.T) / (an * bn.T) / temp
    assert out2.shape == (N2, M2)
    assert jnp.allclose(out2, ref2, atol=5e-3, rtol=5e-3), float(jnp.max(jnp.abs(out2 - ref2)))

    print("KERNEL_OK")
</pallas_src>

<mosaic_0001>
module attributes {stable_mosaic.version = 11 : i64} {
  func.func @_similarity_kernel(%arg0: i32, %arg1: i32, %arg2: i32, %arg3: memref<8x128xf32, #tpu.memory_space<vmem>>, %arg4: memref<128x128xf32, #tpu.memory_space<vmem>>, %arg5: memref<8x1xf32, #tpu.memory_space<vmem>>, %arg6: memref<1x128xf32, #tpu.memory_space<vmem>>, %arg7: memref<8x128xf32, #tpu.memory_space<vmem>>) attributes {dimension_semantics = [#tpu.dimension_semantics<parallel>, #tpu.dimension_semantics<parallel>, #tpu.dimension_semantics<arbitrary>], iteration_bounds = array<i64: 1, 1, 1>, scalar_prefetch = 0 : i64, scratch_operands = 0 : i64, tpu.core_type = #tpu.core_type<tc>, window_params = [{transform_indices = @transform_0, window_bounds = array<i64: 8, 128>}, {transform_indices = @transform_1, window_bounds = array<i64: 128, 128>}, {transform_indices = @transform_2, window_bounds = array<i64: 8, 1>}, {transform_indices = @transform_3, window_bounds = array<i64: 1, 128>}, {transform_indices = @transform_4, window_bounds = array<i64: 8, 128>}]} {
    %c0_i32 = arith.constant 0 : i32
    %0 = arith.cmpi eq, %arg2, %c0_i32 : i32
    %1 = arith.extui %0 : i1 to i32
    %c0_i32_0 = arith.constant 0 : i32
    %2 = arith.cmpi ne, %1, %c0_i32_0 : i32
    scf.if %2 {
      %cst_10 = arith.constant 0.000000e+00 : f32
      %12 = vector.broadcast %cst_10 : f32 to vector<8x128xf32>
      %c0_11 = arith.constant 0 : index
      %c0_12 = arith.constant 0 : index
      %13 = vector.load %arg7[%c0_11, %c0_12] : memref<8x128xf32, #tpu.memory_space<vmem>>, vector<8x128xf32>
      tpu.vector_store %arg7[%c0_11, %c0_12], %12 {strides = array<i32>} : memref<8x128xf32, #tpu.memory_space<vmem>>, vector<8x128xf32>,
    } else {
    }
    %c0 = arith.constant 0 : index
    %c0_1 = arith.constant 0 : index
    %3 = vector.load %arg7[%c0, %c0_1] : memref<8x128xf32, #tpu.memory_space<vmem>>, vector<8x128xf32>
    %c0_2 = arith.constant 0 : index
    %c0_3 = arith.constant 0 : index
    %4 = vector.load %arg3[%c0_2, %c0_3] : memref<8x128xf32, #tpu.memory_space<vmem>>, vector<8x128xf32>
    %c0_4 = arith.constant 0 : index
    %c0_5 = arith.constant 0 : index
    %5 = vector.load %arg4[%c0_4, %c0_5] : memref<128x128xf32, #tpu.memory_space<vmem>>, vector<128x128xf32>
    %cst = arith.constant dense<0.000000e+00> : vector<8x128xf32>
    %6 = tpu.matmul %4, %5, %cst {dimension_numbers = #tpu.dot_dimension_numbers<[1], [0], [0], [1], [0, 0, 1, 1], [], []>} : vector<8x128xf32>, vector<128x128xf32>, vector<8x128xf32> -> vector<8x128xf32>
    %7 = arith.addf %3, %6 : vector<8x128xf32>
    %c0_6 = arith.constant 0 : index
    %c0_7 = arith.constant 0 : index
    %8 = vector.load %arg7[%c0_6, %c0_7] : memref<8x128xf32, #tpu.memory_space<vmem>>, vector<8x128xf32>
    tpu.vector_store %arg7[%c0_6, %c0_7], %7 {strides = array<i32>} : memref<8x128xf32, #tpu.memory_space<vmem>>, vector<8x128xf32>,
    %c0_i32_8 = arith.constant 0 : i32
    %9 = arith.cmpi eq, %arg2, %c0_i32_8 : i32
    %10 = arith.extui %9 : i1 to i32
    %c0_i32_9 = arith.constant 0 : i32
    %11 = arith.cmpi ne, %10, %c0_i32_9 : i32
    scf.if %11 {
      %c0_10 = arith.constant 0 : index
      %c0_11 = arith.constant 0 : index
      %12 = vector.load %arg7[%c0_10, %c0_11] : memref<8x128xf32, #tpu.memory_space<vmem>>, vector<8x128xf32>
      %c0_12 = arith.constant 0 : index
      %c0_13 = arith.constant 0 : index
      %13 = vector.load %arg5[%c0_12, %c0_13] : memref<8x1xf32, #tpu.memory_space<vmem>>, vector<8x1xf32>
      %c0_14 = arith.constant 0 : index
      %c0_15 = arith.constant 0 : index
      %14 = vector.load %arg6[%c0_14, %c0_15] : memref<1x128xf32, #tpu.memory_space<vmem>>, vector<1x128xf32>
      %15 = vector.broadcast %13 : vector<8x1xf32> to vector<8x128xf32>
      %16 = vector.broadcast %14 : vector<1x128xf32> to vector<8x128xf32>
      %17 = arith.mulf %15, %16 : vector<8x128xf32>
      %18 = arith.mulf %12, %17 : vector<8x128xf32>
      %c0_16 = arith.constant 0 : index
      %c0_17 = arith.constant 0 : index
      %19 = vector.load %arg7[%c0_16, %c0_17] : memref<8x128xf32, #tpu.memory_space<vmem>>, vector<8x128xf32>
      tpu.vector_store %arg7[%c0_16, %c0_17], %18 {strides = array<i32>} : memref<8x128xf32, #tpu.memory_space<vmem>>, vector<8x128xf32>,
    } else {
    }
    return
  }
  func.func @transform_0(%arg0: i32, %arg1: i32, %arg2: i32) -> (i32, i32) {
    %c0_i32 = arith.constant 0 : i32
    return %arg0, %arg2 : i32, i32
  }
  func.func @transform_1(%arg0: i32, %arg1: i32, %arg2: i32) -> (i32, i32) {
    %c0_i32 = arith.constant 0 : i32
    return %arg2, %arg1 : i32, i32
  }
  func.func @transform_2(%arg0: i32, %arg1: i32, %arg2: i32) -> (i32, i32) {
    %c0_i32 = arith.constant 0 : i32
    %c0_i32_0 = arith.constant 0 : i32
    return %arg0, %c0_i32 : i32, i32
  }
  func.func @transform_3(%arg0: i32, %arg1: i32, %arg2: i32) -> (i32, i32) {
    %c0_i32 = arith.constant 0 : i32
    %c0_i32_0 = arith.constant 0 : i32
    return %c0_i32, %arg1 : i32, i32
  }
  func.func @transform_4(%arg0: i32, %arg1: i32, %arg2: i32) -> (i32, i32) {
    %c0_i32 = arith.constant 0 : i32
    return %arg0, %arg1 : i32, i32
  }
}

</mosaic_0001>

<bundles_post_ra>
// kernel: tpu_custom_call.1
= control target key start
LH: loop header
LB: loop body
LE: loop exit
PB: predicated region body
PF: predicated region fallthrough
CT: control target
= control target key end

     0   :  { %9 = vsyncpa [#allocation3], 0  ;;  %s218_s0 = inlined_call_operand.vmem [shape: f32[8,128], index: 0, kind: input, shape index: {}]   ;;  %s219_s1 = inlined_call_operand.hbm [shape: f32[128,128], index: 1, kind: input, shape index: {}]   ;;  %s220_s2 = inlined_call_operand.vmem [shape: f32[8,1], index: 2, kind: input, shape index: {}]   ;;  %s221_s3 = inlined_call_operand.vmem [shape: f32[1,128], index: 3, kind: input, shape index: {}]   ;;  %s222_s4 = inlined_call_operand.hbm [shape: f32[8,128], index: 4, kind: output, shape index: {}]  }
   0x1   :  { %10 = vsyncpa [#allocation4], 0  ;;  %s17_s17 = sshll.u32 %s219_s1, 4  ;;  %s173_s18 = smov [#allocation2]   ;;  %s18_s17 = int_to_ptr.hbm [resolvable:$true] %s17_s17 }
   0x2   :  { %s19_s19 = sshll.u32 %s173_s18, 4  ;;  %s174_s20 = smov 128   ;;  %s20_s19 = int_to_ptr.vmem [resolvable:$true] %s19_s19 }
   0x3   :  { %s175_s21 = smov 8  }
   0x4   :  { %25 = dma.hbm_to_vmem [thread:$0]  %s18_s17, 2048, %s20_s19, [#allocation3], %s174_s20, %s174_s20, %s175_s21  }
   0x5   :  { %169 = dma.done.wait [#allocation3], 2048  }
   0x6   :  { %170 = vsyncadd [#allocation3], 4294965248  ;;  %v56_v0 = vld [vmem:[#allocation2 + $0x78] sm:$0xff]  ;;  %v55_v1 = vld [vmem:[#allocation2 + $0x70] sm:$0xff]  ;;  %v176_v2 = vmov 0   ;;  %s177_s26 = smov [#allocation5]  }
   0x7   :  { %57 = vmatpush.msra.mxu0 %v56_v0  ;;  %119 = vset.pattern.permute.xlu0 %v176_v2  ;;  %v54_v3 = vld [vmem:[#allocation2 + $0x68] sm:$0xff]  ;;  %v53_v4 = vld [vmem:[#allocation2 + $0x60] sm:$0xff]  ;;  %v52_v6 = vld [vmem:[#allocation2 + $0x58] sm:$0xff]  ;;  %s101_s27 = sshll.u32 %s177_s26, 4  ;;  %s103_s30 = sshll.u32 %s222_s4, 4  ;;  %s102_s27 = int_to_ptr.vmem [resolvable:$true] %s101_s27  ;;  %s104_s30 = int_to_ptr.hbm [resolvable:$true] %s103_s30 }
   0x8   :  { %v83_v5 = vld [vmem:[%s220_s2] sm:$0xff]  ;;  %v51_v7 = vld [vmem:[#allocation2 + $0x50] sm:$0xff]  ;;  %v50_v8 = vld [vmem:[#allocation2 + $0x48] sm:$0xff] }
   0x9   :  { %58 = vmatpush.msra.mxu0 %v55_v1  ;;  %87 = vperm.xlu0 %119, %v83_v5   ;;  %v49_v9 = vld [vmem:[#allocation2 + $0x40] sm:$0xff]  ;;  %v48_v10 = vld [vmem:[#allocation2 + $0x38] sm:$0xff]  ;;  %v47_v11 = vld [vmem:[#allocation2 + $0x30] sm:$0xff] }
   0xa   :  { %v46_v12 = vld [vmem:[#allocation2 + $0x28] sm:$0xff]  ;;  %v45_v13 = vld [vmem:[#allocation2 + $0x20] sm:$0xff]  ;;  %v44_v14 = vld [vmem:[#allocation2 + $0x18] sm:$0xff] }
   0xb   :  { %59 = vmatpush.msra.mxu0 %v54_v3  ;;  %v43_v15 = vld [vmem:[#allocation2 + $0x10] sm:$0xff]  ;;  %v42_v16 = vld [vmem:[#allocation2 + $0x8] sm:$0xff]  ;;  %v41_v17 = vld [vmem:[#allocation2] sm:$0xff] }
   0xc   :  { %v40_v18 = vld [vmem:[%s218_s0] sm:$0xff] }
   0xd   :  { %60 = vmatpush.msra.mxu0 %v53_v4  ;;  %v120_v19 = vld [vmem:[%s221_s3] ss:$0 sm:$0xff] }
   0xf   :  { %61 = vmatpush.msra.mxu0 %v52_v6 }
  0x11   :  { %62 = vmatpush.msra.mxu0 %v51_v7 }
  0x13   :  { %63 = vmatpush.msra.mxu0 %v50_v8 }
  0x15   :  { %64 = vmatpush.msra.mxu0 %v49_v9 }
  0x17   :  { %65 = vmatpush.msra.mxu0 %v48_v10 }
  0x19   :  { %66 = vmatpush.msra.mxu0 %v47_v11 }
  0x1b   :  { %67 = vmatpush.msra.mxu0 %v46_v12 }
  0x1d   :  { %68 = vmatpush.msra.mxu0 %v45_v13 }
  0x1f   :  { %69 = vmatpush.msra.mxu0 %v44_v14 }
  0x21   :  { %70 = vmatpush.msra.mxu0 %v43_v15 }
  0x23   :  { %71 = vmatpush.msra.mxu0 %v42_v16 }
  0x25   :  { %72 = vmatpush.msra.mxu0 %v41_v17 }
  0x26   :  { %73 = vmatmul.f32.vlgmr.msra.gmra.mxu0 %v40_v18 }
  0x7b   :  { %v88_v20 = vpop.permute.xlu0 %87 }
  0x7c   :  { %v93_v21 = vmul.f32 %v120_v19, %v88_v20 }
  0xa3   :  { %v74_v22 = vpop.f32.mrf.mxu0 }
  0xa4   :  { %v94_v23 = vmul.f32 %v93_v21, %v74_v22 }
  0xa6   :  { %95 = vst [vmem:[#allocation5] sm:$0xff] %v94_v23 }
  0xa7   :  { %106 = dma.vmem_to_hbm [thread:$0]  %s102_s27, 128, %s104_s30, [#allocation4]  }
  0xa8   :  { %171 = dma.done.wait [#allocation4], 128  }
  0xa9   :  { %172 = vsyncadd [#allocation4], 4294967168 }
  0xaa   :  { %111 = vsyncpa [#allocation3], 1 }
  0xab   :  { %112 = vsyncpa [#allocation4], 1 }

</bundles_post_ra>
